<compile_context>
chip_gen: v5e
topology: v5e:2x2
jax: 0.10.0
libtpu: 0.0.40
codegen_flags: <defaults>
</compile_context>

<pallas_src>
import functools

import jax
import jax.numpy as jnp
from jax.experimental import pallas as pl
from jax.experimental.pallas import tpu as pltpu


# ----------------------------- Pallas kernel ------------------------------- #
def _proj_kernel(x_ref, w_ref, o_ref):
    # x_ref: (K, T)    activation tile for one batch element (spatial on lanes)
    # w_ref: (Npad, K) resident, zero-row-padded conv1x1 weight
    # o_ref: (Npad, T) output tile (lane-dense spatial axis)
    o_ref[...] = jnp.dot(
        w_ref[...], x_ref[...], preferred_element_type=jnp.float32
    ).astype(o_ref.dtype)


def _proj_matmul_nchw(xf, w_pad, *, lane_tile=4096):
    """xf: (n, K, HW) f32, w_pad: (Npad, K) f32 -> (n, Npad, HW) f32."""
    n, k, hw = xf.shape
    npad = w_pad.shape[0]
    # Lane tile: full extent if it fits, else a large multiple of 128.
    t = hw if hw <= lane_tile else lane_tile
    grid = (n, pl.cdiv(hw, t))

    return pl.pallas_call(
        _proj_kernel,
        out_shape=jax.ShapeDtypeStruct((n, npad, hw), jnp.float32),
        grid=grid,
        in_specs=[
            # batch dim squeezed; spatial tiled along lanes
            pl.BlockSpec((None, k, t), lambda b, s: (b, 0, s)),
            # weight: constant index_map -> stays resident in VMEM
            pl.BlockSpec((npad, k), lambda b, s: (0, 0)),
        ],
        out_specs=pl.BlockSpec((None, npad, t), lambda b, s: (b, 0, s)),
        compiler_params=pltpu.CompilerParams(
            dimension_semantics=("parallel", "parallel"),
        ),
    )(xf, w_pad)


# ------------------------------ glue (JAX) --------------------------------- #
def _round_up(x, m):
    return (x + m - 1) // m * m


def depth_to_space(y, block_size):
    """Matches torch.nn.functional.pixel_shuffle(y, block_size)."""
    n, crr, h, w = y.shape
    r = block_size
    c = crr // (r * r)
    y = y.reshape(n, c, r, r, h, w)        # (n, c, i, j, h, w)
    y = y.transpose(0, 1, 4, 2, 5, 3)      # (n, c, h, i, w, j)
    return y.reshape(n, c, h * r, w * r)


@functools.partial(jax.jit, static_argnames=("patch_size",))
def patch_decoder(x, weight, *, patch_size):
    """x: (N, in_ch, H, W) f32; weight: (out_ch*p*p, in_ch, 1, 1) f32.

    Returns (N, out_ch, H*p, W*p), matching PatchDecoder.forward
    (conv1x1 projection, bias=False, followed by pixel_shuffle).
    """
    n, c, h, w = x.shape
    p = patch_size
    n_out = weight.shape[0]                      # out_ch * p * p
    hw = h * w

    # Zero-pad the (tiny) weight's output-channel axis to a sublane multiple.
    w2 = weight.reshape(n_out, c)
    npad = _round_up(n_out, 8)
    if npad != n_out:
        w2 = jnp.pad(w2, ((0, npad - n_out), (0, 0)))

    xf = x.reshape(n, c, hw)                     # free reshape, stays NCHW
    y = _proj_matmul_nchw(xf, w2)                # (n, npad, hw)
    y = y[:, :n_out, :].reshape(n, n_out, h, w)  # slice fuses into the shuffle
    # TODO(synk): pixel_shuffle is a pure layout permutation; left to XLA
    # rather than scattered from inside the kernel's output BlockSpec.
    return depth_to_space(y, p)


# --------------------------------- main ------------------------------------ #
if __name__ == "__main__":
    # Small shapes consistent with the module: decoder takes a hidden feature
    # map and upsamples by patch_size=7.
    batch, in_ch, spatial = 2, 32, 16
    patch_size = 7
    out_ch = 4
    n_out = out_ch * patch_size * patch_size     # 196

    key = jax.random.PRNGKey(0)
    kx, kw = jax.random.split(key)
    x = jax.random.normal(kx, (batch, in_ch, spatial, spatial), dtype=jnp.float32)

    bound = 1.0 / (in_ch ** 0.5)                 # kaiming-uniform-ish, deterministic
    weight = jax.random.uniform(
        kw, (n_out, in_ch, 1, 1), minval=-bound, maxval=bound, dtype=jnp.float32
    )
    # NOTE: conv1x1 assumed bias=False (standard resnet-style conv1x1).

    out = patch_decoder(x, weight, patch_size=patch_size)
    out = jax.block_until_ready(out)

    # Pure-JAX reference for correctness.
    y_ref = jnp.einsum("nchw,oc->nohw", x, weight.reshape(n_out, in_ch))
    ref = depth_to_space(y_ref, patch_size)

    assert out.shape == (batch, out_ch, spatial * patch_size, spatial * patch_size)
    assert jnp.allclose(out, ref, atol=1e-4, rtol=1e-4)

    print("KERNEL_OK")
</pallas_src>

<mosaic_0001>
module attributes {stable_mosaic.version = 11 : i64} {
  func.func @_proj_kernel(%arg0: i32, %arg1: i32, %arg2: memref<1x32x256xf32, #tpu.memory_space<vmem>>, %arg3: memref<200x32xf32, #tpu.memory_space<vmem>>, %arg4: memref<1x200x256xf32, #tpu.memory_space<vmem>>) attributes {dimension_semantics = [#tpu.dimension_semantics<parallel>, #tpu.dimension_semantics<parallel>], iteration_bounds = array<i64: 2, 1>, scalar_prefetch = 0 : i64, scratch_operands = 0 : i64, tpu.core_type = #tpu.core_type<tc>, window_params = [{transform_indices = @transform_0, window_bounds = array<i64: 1, 32, 256>}, {pipeline_mode = #tpu.pipeline_mode<synchronous>, transform_indices = @transform_1, window_bounds = array<i64: 200, 32>}, {transform_indices = @transform_2, window_bounds = array<i64: 1, 200, 256>}]} {
    %c0 = arith.constant 0 : index
    %c0_0 = arith.constant 0 : index
    %0 = vector.load %arg3[%c0, %c0_0] : memref<200x32xf32, #tpu.memory_space<vmem>>, vector<200x32xf32>
    %c0_1 = arith.constant 0 : index
    %c0_2 = arith.constant 0 : index
    %c0_3 = arith.constant 0 : index
    %1 = vector.load %arg2[%c0_1, %c0_2, %c0_3] : memref<1x32x256xf32, #tpu.memory_space<vmem>>, vector<1x32x256xf32>
    %2 = vector.shape_cast %1 : vector<1x32x256xf32> to vector<32x256xf32>
    %cst = arith.constant dense<0.000000e+00> : vector<200x256xf32>
    %3 = tpu.matmul %0, %2, %cst {dimension_numbers = #tpu.dot_dimension_numbers<[1], [0], [0], [1], [0, 0, 1, 1], [], []>} : vector<200x32xf32>, vector<32x256xf32>, vector<200x256xf32> -> vector<200x256xf32>
    %c0_4 = arith.constant 0 : index
    %c0_5 = arith.constant 0 : index
    %c0_6 = arith.constant 0 : index
    %4 = vector.load %arg4[%c0_4, %c0_5, %c0_6] : memref<1x200x256xf32, #tpu.memory_space<vmem>>, vector<1x200x256xf32>
    %5 = vector.shape_cast %4 : vector<1x200x256xf32> to vector<200x256xf32>
    %6 = vector.shape_cast %3 : vector<200x256xf32> to vector<1x200x256xf32>
    tpu.vector_store %arg4[%c0_4, %c0_5, %c0_6], %6 {strides = array<i32>} : memref<1x200x256xf32, #tpu.memory_space<vmem>>, vector<1x200x256xf32>,
    return
  }
  func.func @transform_0(%arg0: i32, %arg1: i32) -> (i32, i32, i32) {
    %c0_i32 = arith.constant 0 : i32
    %c0_i32_0 = arith.constant 0 : i32
    return %arg0, %c0_i32, %arg1 : i32, i32, i32
  }
  func.func @transform_1(%arg0: i32, %arg1: i32) -> (i32, i32) {
    %c0_i32 = arith.constant 0 : i32
    %c0_i32_0 = arith.constant 0 : i32
    %c0_i32_1 = arith.constant 0 : i32
    return %c0_i32, %c0_i32_0 : i32, i32
  }
  func.func @transform_2(%arg0: i32, %arg1: i32) -> (i32, i32, i32) {
    %c0_i32 = arith.constant 0 : i32
    %c0_i32_0 = arith.constant 0 : i32
    return %arg0, %c0_i32, %arg1 : i32, i32, i32
  }
}

</mosaic_0001>

<bundles_post_ra>
// kernel: patch_decoder.1
= control target key start
LH: loop header
LB: loop body
LE: loop exit
PB: predicated region body
PF: predicated region fallthrough
CT: control target
= control target key end

     0   :  { %s746_s9 = smov 0   ;;  %s748_s10 = smov 0   ;;  %s960_s0 = inlined_call_operand.vmem [shape: f32[2,32,256], index: 0, kind: input, shape index: {}]   ;;  %s961_s1 = inlined_call_operand.vmem [shape: f32[200,32], index: 1, kind: input, shape index: {}]   ;;  %s962_s2 = inlined_call_operand.vmem [shape: f32[2,200,256], index: 2, kind: output, shape index: {}]  }
   0x1   :  { %s750_s11 = smov 0  }
   0x2 LB: > { %s24_s12 = sadd.s32 1, %s725_s10  ;;  %p617_p0 = scmp.ge.s32.totalorder %s729_s11, 1  ;;  %s729_s11 = sphi %s750_s11, %s12_s11   ;;  %s725_s10 = sphi %s748_s10, %s964_s10   ;;  %s721_s9 = sphi %s746_s9, %s963_s9  }
   0x3   : > { %p26_p1 = scmp.ge.s32.totalorder %s24_s12, 2  ;;  %p133_p2 = scmp.lt.s32.totalorder %s729_s11, 3 }
   0x5   : > { %s966_s12 = smov (%p26_p1, %s24_s12), 0  ;;  %p134_p3 = pnand %p617_p0, %p133_p2 }
   0x6   : > { %p164_p4 = scmp.lt.s32.totalorder (!%p134_p3), %s721_s9, 1 }
   0x7   : > { %137 = sbr.rel (%p134_p3) target bundleno = 249 (0xf9), region = 28 }
   0xc   : > { %s968_s9 = smov (!%p164_p4, %s721_s9), 1  ;;  %v183_v8 = vld [vmem:[%s961_s1] sm:$0xff]  ;;  %vm216_vm0 = vcmask 261120   ;;  %v196_v9 = vld [vmem:[%s961_s1 + $0x68] sm:$0xff]  ;;  %v197_v11 = vld [vmem:[%s961_s1 + $0x70] sm:$0xff] }
   0xd   : > { %s673_s13 = sshll.u32 %s968_s9, 6  ;;  %v184_v10 = vld [vmem:[%s961_s1 + $0x8] sm:$0xff]  ;;  %v185_v12 = vld [vmem:[%s961_s1 + $0x10] sm:$0xff]  ;;  %v198_v13 = vld [vmem:[%s961_s1 + $0x78] sm:$0xff]  ;;  %s682_s19 = smul.u32 400, %s968_s9 }
   0xe   : > { %s171_s16 = scalar_lea.vmem %s960_s0, %s673_s13  ;;  %v186_v14 = vld [vmem:[%s961_s1 + $0x18] sm:$0xff]  ;;  %v199_v15 = vld [vmem:[%s961_s1 + $0x80] sm:$0xff]  ;;  %v200_v17 = vld [vmem:[%s961_s1 + $0x88] sm:$0xff] }
   0xf   : > { %v214_v0 = vld [vmem:[%s171_s16 + $0x30] sm:$0xff]  ;;  %v215_v1 = vld [vmem:[%s171_s16 + $0x38] sm:$0xff]  ;;  %v212_v2 = vld [vmem:[%s171_s16 + $0x20] sm:$0xff]  ;;  %s899_s22 = scalar_lea.vmem %s962_s2, %s682_s19 }
  0x10   : > { %304 = vmatpush.msra.mxu0 %v214_v0  ;;  %396 = vmatpush.msra.mxu1 %v215_v1  ;;  %v213_v3 = vld [vmem:[%s171_s16 + $0x28] sm:$0xff]  ;;  %v210_v4 = vld [vmem:[%s171_s16 + $0x10] sm:$0xff]  ;;  %v211_v5 = vld [vmem:[%s171_s16 + $0x18] sm:$0xff] }
  0x11   : > { %674 = vmatpush.msra.mxu2 %v214_v0  ;;  %678 = vmatpush.msra.mxu3 %v215_v1  ;;  %v208_v6 = vld [vmem:[%s171_s16] sm:$0xff]  ;;  %v209_v7 = vld [vmem:[%s171_s16 + $0x8] sm:$0xff]  ;;  %v201_v19 = vld [vmem:[%s961_s1 + $0x90] sm:$0xff] }
  0x12   : > { %305 = vmatpush.msra.mxu0 %v212_v2  ;;  %397 = vmatpush.msra.mxu1 %v213_v3  ;;  %v187_v16 = vld [vmem:[%s961_s1 + $0x20] sm:$0xff]  ;;  %v188_v18 = vld [vmem:[%s961_s1 + $0x28] sm:$0xff]  ;;  %v189_v20 = vld [vmem:[%s961_s1 + $0x30] sm:$0xff] }
  0x13   : > { %675 = vmatpush.msra.mxu2 %v212_v2  ;;  %679 = vmatpush.msra.mxu3 %v213_v3  ;;  %v202_v21 = vld [vmem:[%s961_s1 + $0x98] sm:$0xff]  ;;  %v203_v23 = vld [vmem:[%s961_s1 + $0xa0] sm:$0xff]  ;;  %v204_v25 = vld [vmem:[%s961_s1 + $0xa8] sm:$0xff] }
  0x14   : > { %306 = vmatpush.msra.mxu0 %v210_v4  ;;  %398 = vmatpush.msra.mxu1 %v211_v5  ;;  %v190_v22 = vld [vmem:[%s961_s1 + $0x38] sm:$0xff]  ;;  %v191_v24 = vld [vmem:[%s961_s1 + $0x40] sm:$0xff]  ;;  %v192_v26 = vld [vmem:[%s961_s1 + $0x48] sm:$0xff] }
  0x15   : > { %676 = vmatpush.msra.mxu2 %v210_v4  ;;  %680 = vmatpush.msra.mxu3 %v211_v5  ;;  %v205_v27 = vld [vmem:[%s961_s1 + $0xb0] sm:$0xff]  ;;  %v206_v29 = vld [vmem:[%s961_s1 + $0xb8] sm:$0xff]  ;;  %v207_v31 = vld [vmem:[%s961_s1 + $0xc0] sm:$0xff] }
  0x16   : > { %307 = vmatpush.msra.mxu0 %v208_v6  ;;  %399 = vmatpush.msra.mxu1 %v209_v7  ;;  %v193_v28 = vld [vmem:[%s961_s1 + $0x50] sm:$0xff]  ;;  %v194_v30 = vld [vmem:[%s961_s1 + $0x58] sm:$0xff]  ;;  %v195_v32 = vld [vmem:[%s961_s1 + $0x60] sm:$0xff] }
  0x17   : > { %621 = vmatmul.msk.f32.vlgmr.msra.gmra.mxu0 %vm216_vm0, %v183_v8  ;;  %646 = vmatmul.msk.f32.vlgmr.msra.gmra.mxu1 %vm216_vm0, %v183_v8 }
  0x18   : > { %677 = vmatpush.msra.mxu2 %v208_v6  ;;  %681 = vmatpush.msra.mxu3 %v209_v7 }
  0x19   : > { %634 = vmatmul.msk.f32.vlgmr.msra.gmra.mxu2 %vm216_vm0, %v196_v9  ;;  %659 = vmatmul.msk.f32.vlgmr.msra.gmra.mxu3 %vm216_vm0, %v196_v9 }
  0x1f   : > { %622 = vmatmul.msk.f32.gmra.mxu0 %vm216_vm0, %v184_v10  ;;  %647 = vmatmul.msk.f32.gmra.mxu1 %vm216_vm0, %v184_v10 }
  0x21   : > { %635 = vmatmul.msk.f32.gmra.mxu2 %vm216_vm0, %v197_v11  ;;  %660 = vmatmul.msk.f32.gmra.mxu3 %vm216_vm0, %v197_v11 }
  0x27   : > { %623 = vmatmul.msk.f32.gmra.mxu0 %vm216_vm0, %v185_v12  ;;  %648 = vmatmul.msk.f32.gmra.mxu1 %vm216_vm0, %v185_v12 }
  0x29   : > { %636 = vmatmul.msk.f32.gmra.mxu2 %vm216_vm0, %v198_v13  ;;  %661 = vmatmul.msk.f32.gmra.mxu3 %vm216_vm0, %v198_v13 }
  0x2f   : > { %624 = vmatmul.msk.f32.gmra.mxu0 %vm216_vm0, %v186_v14  ;;  %649 = vmatmul.msk.f32.gmra.mxu1 %vm216_vm0, %v186_v14 }
  0x31   : > { %637 = vmatmul.msk.f32.gmra.mxu2 %vm216_vm0, %v199_v15  ;;  %662 = vmatmul.msk.f32.gmra.mxu3 %vm216_vm0, %v199_v15 }
  0x37   : > { %625 = vmatmul.msk.f32.gmra.mxu0 %vm216_vm0, %v187_v16  ;;  %650 = vmatmul.msk.f32.gmra.mxu1 %vm216_vm0, %v187_v16 }
  0x39   : > { %638 = vmatmul.msk.f32.gmra.mxu2 %vm216_vm0, %v200_v17  ;;  %663 = vmatmul.msk.f32.gmra.mxu3 %vm216_vm0, %v200_v17 }
  0x3f   : > { %626 = vmatmul.msk.f32.gmra.mxu0 %vm216_vm0, %v188_v18  ;;  %651 = vmatmul.msk.f32.gmra.mxu1 %vm216_vm0, %v188_v18 }
  0x41   : > { %639 = vmatmul.msk.f32.gmra.mxu2 %vm216_vm0, %v201_v19  ;;  %664 = vmatmul.msk.f32.gmra.mxu3 %vm216_vm0, %v201_v19 }
  0x47   : > { %627 = vmatmul.msk.f32.gmra.mxu0 %vm216_vm0, %v189_v20  ;;  %652 = vmatmul.msk.f32.gmra.mxu1 %vm216_vm0, %v189_v20 }
  0x49   : > { %640 = vmatmul.msk.f32.gmra.mxu2 %vm216_vm0, %v202_v21  ;;  %665 = vmatmul.msk.f32.gmra.mxu3 %vm216_vm0, %v202_v21 }
  0x4f   : > { %628 = vmatmul.msk.f32.gmra.mxu0 %vm216_vm0, %v190_v22  ;;  %653 = vmatmul.msk.f32.gmra.mxu1 %vm216_vm0, %v190_v22 }
  0x51   : > { %641 = vmatmul.msk.f32.gmra.mxu2 %vm216_vm0, %v203_v23  ;;  %666 = vmatmul.msk.f32.gmra.mxu3 %vm216_vm0, %v203_v23 }
  0x57   : > { %629 = vmatmul.msk.f32.gmra.mxu0 %vm216_vm0, %v191_v24  ;;  %654 = vmatmul.msk.f32.gmra.mxu1 %vm216_vm0, %v191_v24 }
  0x59   : > { %642 = vmatmul.msk.f32.gmra.mxu2 %vm216_vm0, %v204_v25  ;;  %667 = vmatmul.msk.f32.gmra.mxu3 %vm216_vm0, %v204_v25 }
  0x5f   : > { %630 = vmatmul.msk.f32.gmra.mxu0 %vm216_vm0, %v192_v26  ;;  %655 = vmatmul.msk.f32.gmra.mxu1 %vm216_vm0, %v192_v26 }
  0x61   : > { %643 = vmatmul.msk.f32.gmra.mxu2 %vm216_vm0, %v205_v27  ;;  %668 = vmatmul.msk.f32.gmra.mxu3 %vm216_vm0, %v205_v27 }
  0x67   : > { %631 = vmatmul.msk.f32.gmra.mxu0 %vm216_vm0, %v193_v28  ;;  %656 = vmatmul.msk.f32.gmra.mxu1 %vm216_vm0, %v193_v28 }
  0x69   : > { %644 = vmatmul.msk.f32.gmra.mxu2 %vm216_vm0, %v206_v29  ;;  %669 = vmatmul.msk.f32.gmra.mxu3 %vm216_vm0, %v206_v29 }
  0x6f   : > { %632 = vmatmul.msk.f32.gmra.mxu0 %vm216_vm0, %v194_v30  ;;  %657 = vmatmul.msk.f32.gmra.mxu1 %vm216_vm0, %v194_v30 }
  0x71   : > { %645 = vmatmul.msk.f32.gmra.mxu2 %vm216_vm0, %v207_v31  ;;  %670 = vmatmul.msk.f32.gmra.mxu3 %vm216_vm0, %v207_v31 }
  0x77   : > { %633 = vmatmul.msk.f32.gmra.mxu0 %vm216_vm0, %v195_v32  ;;  %658 = vmatmul.msk.f32.gmra.mxu1 %vm216_vm0, %v195_v32 }
  0x94   : > { %v309_v33 = vpop.f32.mrf.mxu0  ;;  %v401_v34 = vpop.f32.mrf.mxu1 }
  0x95   : > { %476 = vst [vmem:[%s899_s22] sm:$0xff] %v309_v33 }
  0x96   : > { %477 = vst [vmem:[%s899_s22 + $0x8] sm:$0xff] %v401_v34 }
  0x9c   : > { %v312_v35 = vpop.f32.mrf.mxu0  ;;  %v348_v36 = vpop.f32.mrf.mxu2 }
  0x9d   : > { %478 = vst [vmem:[%s899_s22 + $0x10] sm:$0xff] %v312_v35  ;;  %v404_v37 = vpop.f32.mrf.mxu1  ;;  %v440_v38 = vpop.f32.mrf.mxu3 }
  0x9e   : > { %502 = vst [vmem:[%s899_s22 + $0xd0] sm:$0xff] %v348_v36 }
  0x9f   : > { %479 = vst [vmem:[%s899_s22 + $0x18] sm:$0xff] %v404_v37 }
  0xa0   : > { %503 = vst [vmem:[%s899_s22 + $0xd8] sm:$0xff] %v440_v38 }
  0xa4   : > { %v315_v39 = vpop.f32.mrf.mxu0  ;;  %v351_v40 = vpop.f32.mrf.mxu2 }
  0xa5   : > { %480 = vst [vmem:[%s899_s22 + $0x20] sm:$0xff] %v315_v39  ;;  %v407_v41 = vpop.f32.mrf.mxu1  ;;  %v443_v42 = vpop.f32.mrf.mxu3 }
  0xa6   : > { %504 = vst [vmem:[%s899_s22 + $0xe0] sm:$0xff] %v351_v40 }
  0xa7   : > { %481 = vst [vmem:[%s899_s22 + $0x28] sm:$0xff] %v407_v41 }
  0xa8   : > { %505 = vst [vmem:[%s899_s22 + $0xe8] sm:$0xff] %v443_v42 }
  0xac   : > { %v318_v43 = vpop.f32.mrf.mxu0  ;;  %v354_v44 = vpop.f32.mrf.mxu2 }
  0xad   : > { %482 = vst [vmem:[%s899_s22 + $0x30] sm:$0xff] %v318_v43  ;;  %v410_v45 = vpop.f32.mrf.mxu1  ;;  %v446_v46 = vpop.f32.mrf.mxu3 }
  0xae   : > { %506 = vst [vmem:[%s899_s22 + $0xf0] sm:$0xff] %v354_v44 }
  0xaf   : > { %483 = vst [vmem:[%s899_s22 + $0x38] sm:$0xff] %v410_v45 }
  0xb0   : > { %507 = vst [vmem:[%s899_s22 + $0xf8] sm:$0xff] %v446_v46 }
  0xb4   : > { %v321_v47 = vpop.f32.mrf.mxu0  ;;  %v357_v48 = vpop.f32.mrf.mxu2 }
  0xb5   : > { %484 = vst [vmem:[%s899_s22 + $0x40] sm:$0xff] %v321_v47  ;;  %v413_v49 = vpop.f32.mrf.mxu1  ;;  %v449_v50 = vpop.f32.mrf.mxu3 }
  0xb6   : > { %508 = vst [vmem:[%s899_s22 + $0x100] sm:$0xff] %v357_v48 }
  0xb7   : > { %485 = vst [vmem:[%s899_s22 + $0x48] sm:$0xff] %v413_v49 }
  0xb8   : > { %509 = vst [vmem:[%s899_s22 + $0x108] sm:$0xff] %v449_v50 }
  0xbc   : > { %v324_v51 = vpop.f32.mrf.mxu0  ;;  %v360_v52 = vpop.f32.mrf.mxu2 }
  0xbd   : > { %486 = vst [vmem:[%s899_s22 + $0x50] sm:$0xff] %v324_v51  ;;  %v416_v53 = vpop.f32.mrf.mxu1  ;;  %v452_v54 = vpop.f32.mrf.mxu3 }
  0xbe   : > { %510 = vst [vmem:[%s899_s22 + $0x110] sm:$0xff] %v360_v52 }
  0xbf   : > { %487 = vst [vmem:[%s899_s22 + $0x58] sm:$0xff] %v416_v53 }
  0xc0   : > { %511 = vst [vmem:[%s899_s22 + $0x118] sm:$0xff] %v452_v54 }
  0xc4   : > { %v327_v55 = vpop.f32.mrf.mxu0  ;;  %v363_v56 = vpop.f32.mrf.mxu2 }
  0xc5   : > { %488 = vst [vmem:[%s899_s22 + $0x60] sm:$0xff] %v327_v55  ;;  %v419_v57 = vpop.f32.mrf.mxu1  ;;  %v455_v58 = vpop.f32.mrf.mxu3 }
  0xc6   : > { %512 = vst [vmem:[%s899_s22 + $0x120] sm:$0xff] %v363_v56 }
  0xc7   : > { %489 = vst [vmem:[%s899_s22 + $0x68] sm:$0xff] %v419_v57 }
  0xc8   : > { %513 = vst [vmem:[%s899_s22 + $0x128] sm:$0xff] %v455_v58 }
  0xcc   : > { %v330_v59 = vpop.f32.mrf.mxu0  ;;  %v366_v60 = vpop.f32.mrf.mxu2 }
  0xcd   : > { %490 = vst [vmem:[%s899_s22 + $0x70] sm:$0xff] %v330_v59  ;;  %v422_v61 = vpop.f32.mrf.mxu1  ;;  %v458_v62 = vpop.f32.mrf.mxu3 }
  0xce   : > { %514 = vst [vmem:[%s899_s22 + $0x130] sm:$0xff] %v366_v60 }
  0xcf   : > { %491 = vst [vmem:[%s899_s22 + $0x78] sm:$0xff] %v422_v61 }
  0xd0   : > { %515 = vst [vmem:[%s899_s22 + $0x138] sm:$0xff] %v458_v62 }
  0xd4   : > { %v333_v63 = vpop.f32.mrf.mxu0  ;;  %v369_v0 = vpop.f32.mrf.mxu2 }
  0xd5   : > { %492 = vst [vmem:[%s899_s22 + $0x80] sm:$0xff] %v333_v63  ;;  %v425_v1 = vpop.f32.mrf.mxu1  ;;  %v461_v2 = vpop.f32.mrf.mxu3 }
  0xd6   : > { %516 = vst [vmem:[%s899_s22 + $0x140] sm:$0xff] %v369_v0 }
  0xd7   : > { %493 = vst [vmem:[%s899_s22 + $0x88] sm:$0xff] %v425_v1 }
  0xd8   : > { %517 = vst [vmem:[%s899_s22 + $0x148] sm:$0xff] %v461_v2 }
  0xdc   : > { %v336_v3 = vpop.f32.mrf.mxu0  ;;  %v372_v4 = vpop.f32.mrf.mxu2 }
  0xdd   : > { %494 = vst [vmem:[%s899_s22 + $0x90] sm:$0xff] %v336_v3  ;;  %v428_v5 = vpop.f32.mrf.mxu1  ;;  %v464_v6 = vpop.f32.mrf.mxu3 }
  0xde   : > { %518 = vst [vmem:[%s899_s22 + $0x150] sm:$0xff] %v372_v4 }
  0xdf   : > { %495 = vst [vmem:[%s899_s22 + $0x98] sm:$0xff] %v428_v5 }
  0xe0   : > { %519 = vst [vmem:[%s899_s22 + $0x158] sm:$0xff] %v464_v6 }
  0xe4   : > { %v339_v7 = vpop.f32.mrf.mxu0  ;;  %v375_v8 = vpop.f32.mrf.mxu2 }
  0xe5   : > { %496 = vst [vmem:[%s899_s22 + $0xa0] sm:$0xff] %v339_v7  ;;  %v431_v9 = vpop.f32.mrf.mxu1  ;;  %v467_v10 = vpop.f32.mrf.mxu3 }
  0xe6   : > { %520 = vst [vmem:[%s899_s22 + $0x160] sm:$0xff] %v375_v8 }
  0xe7   : > { %497 = vst [vmem:[%s899_s22 + $0xa8] sm:$0xff] %v431_v9 }
  0xe8   : > { %521 = vst [vmem:[%s899_s22 + $0x168] sm:$0xff] %v467_v10 }
  0xec   : > { %v342_v11 = vpop.f32.mrf.mxu0  ;;  %v378_v12 = vpop.f32.mrf.mxu2 }
  0xed   : > { %498 = vst [vmem:[%s899_s22 + $0xb0] sm:$0xff] %v342_v11  ;;  %v434_v13 = vpop.f32.mrf.mxu1  ;;  %v470_v14 = vpop.f32.mrf.mxu3 }
  0xee   : > { %522 = vst [vmem:[%s899_s22 + $0x170] sm:$0xff] %v378_v12 }
  0xef   : > { %499 = vst [vmem:[%s899_s22 + $0xb8] sm:$0xff] %v434_v13 }
  0xf0   : > { %523 = vst [vmem:[%s899_s22 + $0x178] sm:$0xff] %v470_v14 }
  0xf4   : > { %v345_v15 = vpop.f32.mrf.mxu0  ;;  %v381_v16 = vpop.f32.mrf.mxu2 }
  0xf5   : > { %500 = vst [vmem:[%s899_s22 + $0xc0] sm:$0xff] %v345_v15  ;;  %v437_v17 = vpop.f32.mrf.mxu1  ;;  %v473_v18 = vpop.f32.mrf.mxu3 }
  0xf6   : > { %524 = vst [vmem:[%s899_s22 + $0x180] sm:$0xff] %v381_v16 }
  0xf7   : > { %501 = vst [vmem:[%s899_s22 + $0xc8] sm:$0xff] %v437_v17 }
  0xf8   : > { %525 = vst [vmem:[%s899_s22 + $0x188] sm:$0xff] %v473_v18 }
  0xf9 PF: > { %s12_s11 = sadd.s32 1, %s729_s11   ;;  %s963_s9 = smov %s725_s10 }
  0xfa   : > { %p9_p5 = scmp.ge.s32.totalorder %s12_s11, 4   ;;  %s964_s10 = smov %s966_s12 }
  0xfc   :  { %11 = sbr.rel (!%p9_p5) target bundleno = 2 (0x2), region = 58 }

</bundles_post_ra>
